<compile_context>
chip_gen: v5e
topology: v5e:2x2
jax: 0.10.0
libtpu: 0.0.40
codegen_flags: <defaults>
</compile_context>

<pallas_src>
import jax
import jax.numpy as jnp
from jax import lax
from jax.experimental import pallas as pl
from jax.experimental.pallas import tpu as pltpu

EPS = 1e-5


# ----------------------------------------------------------------------------
# Pass 1: per-channel sum / sum-of-squares of x  (BN1 batch statistics)
# ----------------------------------------------------------------------------
def _bn1_stats_kernel(x_ref, stats_ref):
    """x_ref: (1,H,W,C) bf16.  stats_ref: (2,C) f32 accumulator (row0=sum, row1=sumsq)."""
    @pl.when(pl.program_id(0) == 0)
    def _init():
        stats_ref[...] = jnp.zeros_like(stats_ref)

    _, H, W, C = x_ref.shape
    xf = x_ref[0].astype(jnp.float32).reshape(H * W, C)
    s = jnp.sum(xf, axis=0, keepdims=True)
    q = jnp.sum(xf * xf, axis=0, keepdims=True)
    stats_ref[...] += jnp.concatenate([s, q], axis=0)


# ----------------------------------------------------------------------------
# Pass 2: per-channel sum / sum-of-squares of h = conv1(relu(bn1(x)))  (BN2 stats)
# ----------------------------------------------------------------------------
def _bn2_stats_kernel(x_ref, sc1_ref, sh1_ref, w1_ref, stats_ref):
    @pl.when(pl.program_id(0) == 0)
    def _init():
        stats_ref[...] = jnp.zeros_like(stats_ref)

    _, H, W, C = x_ref.shape
    xf = x_ref[0].astype(jnp.float32).reshape(H * W, C)
    a1 = jnp.maximum(xf * sc1_ref[...] + sh1_ref[...], 0.0)
    h = jnp.dot(a1.astype(jnp.bfloat16), w1_ref[...],
                preferred_element_type=jnp.float32)             # (H*W, IC) f32
    s = jnp.sum(h, axis=0, keepdims=True)
    q = jnp.sum(h * h, axis=0, keepdims=True)
    stats_ref[...] += jnp.concatenate([s, q], axis=0)


# ----------------------------------------------------------------------------
# Pass 3: fused apply kernel, one image per grid step (pipelined + parallel)
# ----------------------------------------------------------------------------
def _bottleneck_apply_kernel(x_ref, sc1_ref, sh1_ref, w1_ref, sc2_ref, sh2_ref,
                             w2_ref, out_ref):
    """
    x_ref:   (1, H, W, C)                 bf16 input image
    sc1/sh1: (1, C)                       f32 folded BN1 scale/shift
    w1_ref:  (C, IC)                      bf16 1x1 conv weight (matmul form)
    sc2/sh2: (1, IC)                      f32 folded BN2 scale/shift
    w2_ref:  (9*IC, G)                    bf16 3x3 conv weight, (ky,kx,ic) major->minor
    out_ref: (H, W*(C+G)) or (H*W, C+G)   bf16, = concat([x, conv2_out], channel)
    """
    _, H, W, C = x_ref.shape
    IC = w1_ref.shape[1]
    G = w2_ref.shape[1]
    HW = H * W

    x_img = x_ref[0]                                            # (H, W, C) bf16
    xf3 = x_img.astype(jnp.float32)
    xf = xf3.reshape(HW, C)

    # ---- BN1 (folded) + ReLU, 1x1 conv as a matmul over C ----
    a1 = jnp.maximum(xf * sc1_ref[...] + sh1_ref[...], 0.0)
    h = jnp.dot(a1.astype(jnp.bfloat16), w1_ref[...],
                preferred_element_type=jnp.float32)             # (HW, IC) f32

    # ---- BN2 (folded) + ReLU ----
    a2 = jnp.maximum(h * sc2_ref[...] + sh2_ref[...], 0.0)      # (HW, IC) f32

    # ---- 3x3 conv, padding=1, as 9 accumulated shifted matmuls ----
    # Zero apron of W+1 rows in flat (y*W + x) index space handles the row (y) boundary;
    # the column (x) boundary is handled with an iota mask (only needed when dx != 0).
    pad = W + 1
    apron = jnp.zeros((pad, IC), jnp.float32)
    padded = jnp.concatenate([apron, a2, apron], axis=0)        # (HW + 2W + 2, IC)

    col = lax.broadcasted_iota(jnp.int32, (HW, 1), 0) % W       # x coordinate per flat row

    acc = jnp.zeros((HW, G), jnp.float32)
    k = 0
    for dy in (-1, 0, 1):
        for dx in (-1, 0, 1):
            shift = dy * W + dx
            sl = padded[pad + shift:pad + shift + HW, :]        # (HW, IC) f32, static slice
            if dx != 0:
                valid = (col + dx >= 0) & (col + dx < W)
                sl = jnp.where(valid, sl, 0.0)
            acc = acc + jnp.dot(sl.astype(jnp.bfloat16),
                                w2_ref[k * IC:(k + 1) * IC, :],
                                preferred_element_type=jnp.float32)
            k += 1

    # ---- fused torch.cat((x, out), channel) + bf16 store ----
    full = jnp.concatenate([xf3, acc.reshape(H, W, G)], axis=-1)   # (H, W, C+G) f32
    out_ref[...] = full.reshape(out_ref.shape).astype(out_ref.dtype)


# ----------------------------------------------------------------------------
# Wrappers
# ----------------------------------------------------------------------------
def _derive_vmem_limit(H, W, C, IC, G):
    """Heuristic per-tile footprint of the apply kernel, with slack; capped < v7x's 64 MiB."""
    hw = H * W
    io = 2 * (hw * C * 2) + 2 * (hw * (C + G) * 2)              # double-buffered in/out blocks
    params = (C * IC + 9 * IC * G) * 2 + 4 * (C + IC) * 4
    interm = hw * (4 * C + 8 * IC + 2 * IC + 4 * G) + (hw + 2 * W + 2) * 4 * IC
    est = io + params + interm
    return int(min(56 << 20, max(32 << 20, 4 * est)))


def bottleneck_forward_nhwc(x_nhwc, params):
    """NHWC in -> NHWC out (channels = nChannels + growthRate); bf16 HBM I/O."""
    g1, b1, w1, g2, b2, w2 = params
    N, H, W, C = x_nhwc.shape
    IC = w1.shape[1]
    G = w2.shape[3]
    P = N * H * W

    x_bf = x_nhwc.astype(jnp.bfloat16)
    w1_bf = w1.astype(jnp.bfloat16)                         # (C, IC)
    w2_bf = w2.reshape(9 * IC, G).astype(jnp.bfloat16)      # matches kernel's (dy, dx) loop order

    x_spec = pl.BlockSpec((1, H, W, C), lambda n: (n, 0, 0, 0))
    vec_spec = lambda d: pl.BlockSpec((1, d), lambda n: (0, 0))
    mat_spec = lambda r, c: pl.BlockSpec((r, c), lambda n: (0, 0))
    stats_spec = lambda d: pl.BlockSpec((2, d), lambda n: (0, 0))

    reduce_params = pltpu.CompilerParams(dimension_semantics=("arbitrary",))

    # ---- pass 1: BN1 batch statistics (grid-accumulated reduction) ----
    stats1 = pl.pallas_call(
        _bn1_stats_kernel,
        grid=(N,),
        in_specs=[x_spec],
        out_specs=stats_spec(C),
        out_shape=jax.ShapeDtypeStruct((2, C), jnp.float32),
        compiler_params=reduce_params,
    )(x_bf)
    m1 = stats1[0:1] / P
    v1 = jnp.maximum(stats1[1:2] / P - m1 * m1, 0.0)
    sc1 = g1 * lax.rsqrt(v1 + EPS)          # folded BN1 scale / shift, f32
    sh1 = b1 - m1 * sc1

    # ---- pass 2: BN2 batch statistics ----
    stats2 = pl.pallas_call(
        _bn2_stats_kernel,
        grid=(N,),
        in_specs=[x_spec, vec_spec(C), vec_spec(C), mat_spec(C, IC)],
        out_specs=stats_spec(IC),
        out_shape=jax.ShapeDtypeStruct((2, IC), jnp.float32),
        compiler_params=reduce_params,
    )(x_bf, sc1, sh1, w1_bf)
    m2 = stats2[0:1] / P
    v2 = jnp.maximum(stats2[1:2] / P - m2 * m2, 0.0)
    sc2 = g2 * lax.rsqrt(v2 + EPS)
    sh2 = b2 - m2 * sc2

    # ---- pass 3: fused apply ----
    # Lane-dense (N*H, W*(C+G)) slab only pays off when the channel dim is tiny; at real
    # DenseNet channel counts (C+G >= 128) skip the sublane->lane fold entirely.
    fold_w = (C + G) < 128 and (W * (C + G)) % 128 == 0
    if fold_w:
        out_shape = jax.ShapeDtypeStruct((N * H, W * (C + G)), jnp.bfloat16)
        out_spec = pl.BlockSpec((H, W * (C + G)), lambda n: (n, 0))
    else:
        out_shape = jax.ShapeDtypeStruct((N * H * W, C + G), jnp.bfloat16)
        out_spec = pl.BlockSpec((H * W, C + G), lambda n: (n, 0))

    out_flat = pl.pallas_call(
        _bottleneck_apply_kernel,
        grid=(N,),
        in_specs=[x_spec, vec_spec(C), vec_spec(C), mat_spec(C, IC),
                  vec_spec(IC), vec_spec(IC), mat_spec(9 * IC, G)],
        out_specs=out_spec,
        out_shape=out_shape,
        compiler_params=pltpu.CompilerParams(
            dimension_semantics=("parallel",),   # shards over v7x's 2 TCs; no-op on v5e/v6e
            vmem_limit_bytes=_derive_vmem_limit(H, W, C, IC, G)),
    )(x_bf, sc1, sh1, w1_bf, sc2, sh2, w2_bf)

    return out_flat.reshape(N, H, W, C + G)                 # contiguous (free) reshape


def bottleneck_forward(x_nchw, params):
    """PyTorch-compatible boundary: NCHW in, NCHW out (bf16). One transpose each way."""
    x_nhwc = jnp.transpose(x_nchw, (0, 2, 3, 1))
    out_nhwc = bottleneck_forward_nhwc(x_nhwc, params)
    return jnp.transpose(out_nhwc, (0, 3, 1, 2))


def make_params(key, nChannels, growthRate):
    interChannels = 4 * growthRate
    k1, k2, k3, k4, k5, k6 = jax.random.split(key, 6)
    g1 = jax.random.uniform(k1, (1, nChannels), jnp.float32, 0.5, 1.5)
    b1 = 0.1 * jax.random.normal(k2, (1, nChannels), jnp.float32)
    # conv1: torch weight (IC, C, 1, 1) -> matmul form (C, IC)
    w1 = jax.random.normal(k3, (nChannels, interChannels), jnp.float32) / jnp.sqrt(nChannels)
    g2 = jax.random.uniform(k4, (1, interChannels), jnp.float32, 0.5, 1.5)
    b2 = 0.1 * jax.random.normal(k5, (1, interChannels), jnp.float32)
    # conv2: torch weight (G, IC, 3, 3) -> HWIO (3, 3, IC, G)
    w2 = jax.random.normal(k6, (3, 3, interChannels, growthRate), jnp.float32) / jnp.sqrt(9 * interChannels)
    return (g1, b1, w1, g2, b2, w2)


def reference_forward(x_nchw, params):
    """Pure-JAX f32 reference (lax.conv) for correctness checking."""
    g1, b1, w1, g2, b2, w2 = params
    C = x_nchw.shape[1]
    interC = w1.shape[1]
    x = jnp.transpose(x_nchw, (0, 2, 3, 1))

    def bn_relu(t, g, b):
        m = jnp.mean(t, axis=(0, 1, 2), keepdims=True)
        v = jnp.mean((t - m) ** 2, axis=(0, 1, 2), keepdims=True)
        return jnp.maximum((t - m) * lax.rsqrt(v + EPS) * g.reshape(1, 1, 1, -1)
                           + b.reshape(1, 1, 1, -1), 0.0)

    a1 = bn_relu(x, g1, b1)
    h = lax.conv_general_dilated(a1, w1.reshape(1, 1, C, interC), (1, 1), 'VALID',
                                 dimension_numbers=('NHWC', 'HWIO', 'NHWC'))
    a2 = bn_relu(h, g2, b2)
    o = lax.conv_general_dilated(a2, w2, (1, 1), 'SAME',
                                 dimension_numbers=('NHWC', 'HWIO', 'NHWC'))
    o_nchw = jnp.transpose(o, (0, 3, 1, 2))
    return jnp.concatenate([x_nchw, o_nchw], axis=1)


if __name__ == "__main__":
    nChannels, growthRate = 4, 4          # interChannels = 16
    N, H, W = 2, 16, 16

    key = jax.random.PRNGKey(0)
    kx, kp = jax.random.split(key)
    x = jax.random.normal(kx, (N, nChannels, H, W), jnp.float32)   # NCHW like torch
    params = make_params(kp, nChannels, growthRate)

    out = jax.block_until_ready(bottleneck_forward(x, params))
    assert out.shape == (N, nChannels + growthRate, H, W), out.shape

    ref = reference_forward(x, params)
    out_f32 = out.astype(jnp.float32)
    max_err = jnp.max(jnp.abs(out_f32 - ref))
    # bf16 activations / weights / I-O vs the f32 reference -> loosened tolerance.
    assert jnp.allclose(out_f32, ref, atol=3e-2, rtol=3e-2), f"max abs err = {max_err}"

    print("KERNEL_OK")
</pallas_src>

<mosaic_0001>
module attributes {stable_mosaic.version = 11 : i64} {
  func.func @_bn1_stats_kernel(%arg0: i32, %arg1: memref<1x16x16x4xbf16, #tpu.memory_space<vmem>>, %arg2: memref<2x4xf32, #tpu.memory_space<vmem>>) attributes {dimension_semantics = [#tpu.dimension_semantics<arbitrary>], iteration_bounds = array<i64: 2>, scalar_prefetch = 0 : i64, scratch_operands = 0 : i64, tpu.core_type = #tpu.core_type<tc>, window_params = [{transform_indices = @transform_0, window_bounds = array<i64: 1, 16, 16, 4>}, {pipeline_mode = #tpu.pipeline_mode<synchronous>, transform_indices = @transform_1, window_bounds = array<i64: 2, 4>}]} {
    %c0_i32 = arith.constant 0 : i32
    %0 = arith.cmpi eq, %arg0, %c0_i32 : i32
    %1 = arith.extui %0 : i1 to i32
    %c0_i32_0 = arith.constant 0 : i32
    %2 = arith.cmpi ne, %1, %c0_i32_0 : i32
    scf.if %2 {
      %cst_9 = arith.constant 0.000000e+00 : f32
      %16 = vector.broadcast %cst_9 : f32 to vector<2x4xf32>
      %c0_10 = arith.constant 0 : index
      %c0_11 = arith.constant 0 : index
      %17 = vector.load %arg2[%c0_10, %c0_11] : memref<2x4xf32, #tpu.memory_space<vmem>>, vector<2x4xf32>
      tpu.vector_store %arg2[%c0_10, %c0_11], %16 {strides = array<i32>} : memref<2x4xf32, #tpu.memory_space<vmem>>, vector<2x4xf32>,
    } else {
    }
    %c0 = arith.constant 0 : index
    %c0_1 = arith.constant 0 : index
    %c0_2 = arith.constant 0 : index
    %c0_3 = arith.constant 0 : index
    %3 = vector.load %arg1[%c0, %c0_1, %c0_2, %c0_3] : memref<1x16x16x4xbf16, #tpu.memory_space<vmem>>, vector<1x16x16x4xbf16>
    %4 = vector.shape_cast %3 : vector<1x16x16x4xbf16> to vector<16x16x4xbf16>
    %5 = arith.extf %4 : vector<16x16x4xbf16> to vector<16x16x4xf32>
    %6 = vector.shape_cast %5 : vector<16x16x4xf32> to vector<256x4xf32>
    %cst = arith.constant dense<0.000000e+00> : vector<4xf32>
    %7 = vector.multi_reduction <add>, %6, %cst [0] : vector<256x4xf32> to vector<4xf32>
    %8 = vector.shape_cast %7 : vector<4xf32> to vector<1x4xf32>
    %9 = arith.mulf %6, %6 : vector<256x4xf32>
    %cst_4 = arith.constant dense<0.000000e+00> : vector<4xf32>
    %10 = vector.multi_reduction <add>, %9, %cst_4 [0] : vector<256x4xf32> to vector<4xf32>
    %11 = vector.shape_cast %10 : vector<4xf32> to vector<1x4xf32>
    %c0_5 = arith.constant 0 : index
    %c0_6 = arith.constant 0 : index
    %12 = vector.load %arg2[%c0_5, %c0_6] : memref<2x4xf32, #tpu.memory_space<vmem>>, vector<2x4xf32>
    %13 = tpu.concatenate %8, %11 in 0 : vector<1x4xf32>, vector<1x4xf32> -> vector<2x4xf32>
    %14 = arith.addf %12, %13 : vector<2x4xf32>
    %c0_7 = arith.constant 0 : index
    %c0_8 = arith.constant 0 : index
    %15 = vector.load %arg2[%c0_7, %c0_8] : memref<2x4xf32, #tpu.memory_space<vmem>>, vector<2x4xf32>
    tpu.vector_store %arg2[%c0_7, %c0_8], %14 {strides = array<i32>} : memref<2x4xf32, #tpu.memory_space<vmem>>, vector<2x4xf32>,
    return
  }
  func.func @transform_0(%arg0: i32) -> (i32, i32, i32, i32) {
    %c0_i32 = arith.constant 0 : i32
    %c0_i32_0 = arith.constant 0 : i32
    %c0_i32_1 = arith.constant 0 : i32
    %c0_i32_2 = arith.constant 0 : i32
    return %arg0, %c0_i32, %c0_i32_0, %c0_i32_1 : i32, i32, i32, i32
  }
  func.func @transform_1(%arg0: i32) -> (i32, i32) {
    %c0_i32 = arith.constant 0 : i32
    %c0_i32_0 = arith.constant 0 : i32
    %c0_i32_1 = arith.constant 0 : i32
    return %c0_i32, %c0_i32_0 : i32, i32
  }
}

</mosaic_0001>

<bundles_post_ra>
// kernel: tpu_custom_call.1
= control target key start
LH: loop header
LB: loop body
LE: loop exit
PB: predicated region body
PF: predicated region fallthrough
CT: control target
= control target key end

     0   :  { %6 = vsyncpa [#allocation3], 0  ;;  %s557_s6 = smov 0   ;;  %s662_s0 = inlined_call_operand.vmem [shape: bf16[2,16,16,4], index: 0, kind: input, shape index: {}]   ;;  %s663_s1 = inlined_call_operand.hbm [shape: f32[2,4], index: 1, kind: output, shape index: {}]  }
   0x1 LB: > { %s563_s7 = sadd.s32 4294967295, %s543_s6   ;;  %p401_p0 = scmp.ge.s32.totalorder %s543_s6, 1  ;;  %s543_s6 = sphi %s557_s6, %s12_s6  }
   0x2   : > { %p83_p1 = scmp.lt.s32.totalorder %s543_s6, 3 }
   0x4   : > { %p84_p2 = pnand %p401_p0, %p83_p1 }
   0x5   : > { %p98_p3 = scmp.lt.s32.totalorder (!%p84_p2), %s563_s7, 1  ;;  %p404_p4 = scmp.ne.s32.totalorder (!%p84_p2), %s563_s7, 0 }
   0x6   : > { %87 = sbr.rel (%p84_p2) target bundleno = 109 (0x6d), region = 24 }
   0xb   : > { %s99_s8 = scalar_select %p98_p3, %s563_s7, 1 }
   0xc   : > { %106 = sbr.rel (%p404_p4) target bundleno = 19 (0x13), region = 28 }
   0xd   : > { %s409_s9 = sshll.u32 %s99_s8, 7 }
   0xe   : > { %s572_s12 = scalar_lea.vmem %s662_s0, %s409_s9 }
  0x11   : > { %vm107_vm0 = vcmask 25600   ;;  %v545_v0 = vmov 0.0  }
  0x12   : > { %108 = vst.msk [vmem:[#allocation2] sm:$0x3] %vm107_vm0, %v545_v0 }
  0x13 PF: > { %v411_v1 = vld [vmem:[%s572_s12] sm:$0xff]   ;;  %v474_v2 = vld [vmem:[%s572_s12 + $0x8] sm:$0xff]   ;;  %vm173_vm1 = vcmask 31744   ;;  %v475_v6 = vld [vmem:[%s572_s12 + $0x10] sm:$0xff]   ;;  %vm345_vm2 = vcmask 1040384   ;;  %s546_s13 = smov [#allocation2]  }
  0x14   : > { %v412_v3 = vunpack.c.l.bf16 %v411_v1  ;;  %v413_v4 = vunpack.c.h.bf16 %v411_v1  ;;  %v416_v5 = vunpack.c.l.bf16 %v474_v2  ;;  %v417_v7 = vunpack.c.h.bf16 %v474_v2  ;;  %v476_v14 = vld [vmem:[%s572_s12 + $0x18] sm:$0xff]   ;;  %v477_v21 = vld [vmem:[%s572_s12 + $0x20] sm:$0xff]   ;;  %v478_v31 = vld [vmem:[%s572_s12 + $0x28] sm:$0xff]   ;;  %s356_s14 = sshll.u32 %s546_s13, 4  ;;  %s358_s17 = sshll.u32 %s663_s1, 4  ;;  %s357_s14 = int_to_ptr.vmem [resolvable:$true] %s356_s14  ;;  %s359_s17 = int_to_ptr.hbm [resolvable:$true] %s358_s17 }
  0x15   : > { %v420_v12 = vunpack.c.l.bf16 %v475_v6  ;;  %v421_v16 = vunpack.c.h.bf16 %v475_v6  ;;  %v424_v19 = vunpack.c.l.bf16 %v476_v14  ;;  %v425_v23 = vunpack.c.h.bf16 %v476_v14  ;;  %v479_v44 = vld [vmem:[%s572_s12 + $0x30] sm:$0xff]   ;;  %v480_v57 = vld [vmem:[%s572_s12 + $0x38] sm:$0xff]   ;;  %v481_v6 = vld [vmem:[%s572_s12 + $0x40] sm:$0xff]   ;;  %p493_p5 = scmp.eq.s32.totalorder %s563_s7, 1 }
  0x16   : > { %v174_v8 = vsel %vm173_vm1, %v412_v3, 0.0  ;;  %v175_v9 = vsel %vm173_vm1, %v413_v4, 0.0  ;;  %v177_v10 = vsel %vm173_vm1, %v416_v5, 0.0  ;;  %v179_v13 = vsel %vm173_vm1, %v417_v7, 0.0 }
  0x17   : > { %v176_v11 = vadd.f32 %v175_v9, %v174_v8  ;;  %v181_v17 = vsel %vm173_vm1, %v420_v12, 0.0  ;;  %v183_v20 = vsel %vm173_vm1, %v421_v16, 0.0  ;;  %v185_v24 = vsel %vm173_vm1, %v424_v19, 0.0 }
  0x18   : > { %v243_v25 = vmul.f32 %v412_v3, %v412_v3  ;;  %v244_v27 = vmul.f32 %v413_v4, %v413_v4  ;;  %v245_v28 = vmul.f32 %v416_v5, %v416_v5  ;;  %v428_v29 = vunpack.c.l.bf16 %v477_v21 }
  0x19   : > { %v178_v15 = vadd.f32 %v177_v10, %v176_v11  ;;  %v187_v30 = vsel %vm173_vm1, %v425_v23, 0.0  ;;  %v246_v33 = vmul.f32 %v417_v7, %v417_v7  ;;  %v429_v34 = vunpack.c.h.bf16 %v477_v21 }
  0x1a   : > { %v189_v35 = vsel %vm173_vm1, %v428_v29, 0.0  ;;  %v275_v36 = vsel %vm173_vm1, %v243_v25, 0.0  ;;  %v247_v38 = vmul.f32 %v420_v12, %v420_v12  ;;  %v276_v39 = vsel %vm173_vm1, %v244_v27, 0.0 }
  0x1b   : > { %v180_v18 = vadd.f32 %v179_v13, %v178_v15  ;;  %v278_v40 = vsel %vm173_vm1, %v245_v28, 0.0  ;;  %v432_v41 = vunpack.c.l.bf16 %v478_v31  ;;  %v191_v42 = vsel %vm173_vm1, %v429_v34, 0.0 }
  0x1c   : > { %v277_v43 = vadd.f32 %v276_v39, %v275_v36  ;;  %v248_v46 = vmul.f32 %v421_v16, %v421_v16  ;;  %v280_v47 = vsel %vm173_vm1, %v246_v33, 0.0  ;;  %v433_v48 = vunpack.c.h.bf16 %v478_v31 }
  0x1d   : > { %v182_v22 = vadd.f32 %v181_v17, %v180_v18  ;;  %v193_v49 = vsel %vm173_vm1, %v432_v41, 0.0  ;;  %v249_v52 = vmul.f32 %v424_v19, %v424_v19  ;;  %v282_v53 = vsel %vm173_vm1, %v247_v38, 0.0  ;;  %v482_v19 = vld [vmem:[%s572_s12 + $0x48] sm:$0xff]  }
  0x1e   : > { %v279_v50 = vadd.f32 %v278_v40, %v277_v43  ;;  %v436_v54 = vunpack.c.l.bf16 %v479_v44  ;;  %v195_v55 = vsel %vm173_vm1, %v433_v48, 0.0  ;;  %v250_v59 = vmul.f32 %v425_v23, %v425_v23 }
  0x1f   : > { %v184_v26 = vadd.f32 %v183_v20, %v182_v22  ;;  %v284_v60 = vsel %vm173_vm1, %v248_v46, 0.0  ;;  %v437_v61 = vunpack.c.h.bf16 %v479_v44  ;;  %v251_v1 = vmul.f32 %v428_v29, %v428_v29 }
  0x20   : > { %v281_v56 = vadd.f32 %v280_v47, %v279_v50  ;;  %v197_v62 = vsel %vm173_vm1, %v436_v54, 0.0  ;;  %v286_v2 = vsel %vm173_vm1, %v249_v52, 0.0  ;;  %v440_v3 = vunpack.c.l.bf16 %v480_v57 }
  0x21   : > { %v186_v32 = vadd.f32 %v185_v24, %v184_v26  ;;  %v199_v4 = vsel %vm173_vm1, %v437_v61, 0.0  ;;  %v252_v8 = vmul.f32 %v429_v34, %v429_v34  ;;  %v288_v9 = vsel %vm173_vm1, %v250_v59, 0.0 }
  0x22   : > { %v283_v63 = vadd.f32 %v282_v53, %v281_v56  ;;  %v441_v10 = vunpack.c.h.bf16 %v480_v57  ;;  %v201_v11 = vsel %vm173_vm1, %v440_v3, 0.0  ;;  %v253_v14 = vmul.f32 %v432_v41, %v432_v41 }
  0x23   : > { %v188_v37 = vadd.f32 %v187_v30, %v186_v32  ;;  %v290_v15 = vsel %vm173_vm1, %v251_v1, 0.0  ;;  %v444_v16 = vunpack.c.l.bf16 %v481_v6  ;;  %v254_v21 = vmul.f32 %v433_v48, %v433_v48  ;;  %v483_v32 = vld [vmem:[%s572_s12 + $0x50] sm:$0xff]  }
  0x24   : > { %v285_v5 = vadd.f32 %v284_v60, %v283_v63  ;;  %v203_v17 = vsel %vm173_vm1, %v441_v10, 0.0  ;;  %v292_v22 = vsel %vm173_vm1, %v252_v8, 0.0  ;;  %v445_v23 = vunpack.c.h.bf16 %v481_v6 }
  0x25   : > { %v190_v45 = vadd.f32 %v189_v35, %v188_v37  ;;  %v205_v24 = vsel %vm173_vm1, %v444_v16, 0.0  ;;  %v255_v27 = vmul.f32 %v436_v54, %v436_v54  ;;  %v294_v28 = vsel %vm173_vm1, %v253_v14, 0.0 }
  0x26   : > { %v287_v12 = vadd.f32 %v286_v2, %v285_v5  ;;  %v448_v29 = vunpack.c.l.bf16 %v482_v19  ;;  %v207_v30 = vsel %vm173_vm1, %v445_v23, 0.0  ;;  %v256_v34 = vmul.f32 %v437_v61, %v437_v61 }
  0x27   : > { %v192_v51 = vadd.f32 %v191_v42, %v190_v45  ;;  %v296_v35 = vsel %vm173_vm1, %v254_v21, 0.0  ;;  %v449_v36 = vunpack.c.h.bf16 %v482_v19  ;;  %v257_v40 = vmul.f32 %v440_v3, %v440_v3  ;;  %v484_v45 = vld [vmem:[%s572_s12 + $0x58] sm:$0xff]  }
  0x28   : > { %v289_v18 = vadd.f32 %v288_v9, %v287_v12  ;;  %v209_v37 = vsel %vm173_vm1, %v448_v29, 0.0  ;;  %v298_v41 = vsel %vm173_vm1, %v255_v27, 0.0  ;;  %v452_v42 = vunpack.c.l.bf16 %v483_v32 }
  0x29   : > { %v194_v58 = vadd.f32 %v193_v49, %v192_v51  ;;  %v211_v43 = vsel %vm173_vm1, %v449_v36, 0.0  ;;  %v258_v47 = vmul.f32 %v441_v10, %v441_v10  ;;  %v300_v48 = vsel %vm173_vm1, %v256_v34, 0.0 }
  0x2a   : > { %v291_v25 = vadd.f32 %v290_v15, %v289_v18  ;;  %v453_v49 = vunpack.c.h.bf16 %v483_v32  ;;  %v213_v50 = vsel %vm173_vm1, %v452_v42, 0.0  ;;  %v259_v53 = vmul.f32 %v444_v16, %v444_v16 }
  0x2b   : > { %v196_v0 = vadd.f32 %v195_v55, %v194_v58  ;;  %v302_v54 = vsel %vm173_vm1, %v257_v40, 0.0  ;;  %v456_v55 = vunpack.c.l.bf16 %v484_v45  ;;  %v485_v58 = vld [vmem:[%s572_s12 + $0x60] sm:$0xff]   ;;  %v260_v60 = vmul.f32 %v445_v23, %v445_v23 }
  0x2c   : > { %v293_v31 = vadd.f32 %v292_v22, %v291_v25  ;;  %v215_v56 = vsel %vm173_vm1, %v453_v49, 0.0  ;;  %v304_v61 = vsel %vm173_vm1, %v258_v47, 0.0  ;;  %v261_v2 = vmul.f32 %v448_v29, %v448_v29 }
  0x2d   : > { %v198_v7 = vadd.f32 %v197_v62, %v196_v0  ;;  %v457_v62 = vunpack.c.h.bf16 %v484_v45  ;;  %v217_v63 = vsel %vm173_vm1, %v456_v55, 0.0  ;;  %v306_v3 = vsel %vm173_vm1, %v259_v53, 0.0 }
  0x2e   : > { %v295_v38 = vadd.f32 %v294_v28, %v293_v31  ;;  %v262_v9 = vmul.f32 %v449_v36, %v449_v36  ;;  %v308_v10 = vsel %vm173_vm1, %v260_v60, 0.0  ;;  %v263_v15 = vmul.f32 %v452_v42, %v452_v42 }
  0x2f   : > { %v200_v13 = vadd.f32 %v199_v4, %v198_v7  ;;  %v460_v4 = vunpack.c.l.bf16 %v485_v58  ;;  %v219_v5 = vsel %vm173_vm1, %v457_v62, 0.0  ;;  %v486_v7 = vld [vmem:[%s572_s12 + $0x68] sm:$0xff]   ;;  %v310_v16 = vsel %vm173_vm1, %v261_v2, 0.0 }
  0x30   : > { %v297_v44 = vadd.f32 %v296_v35, %v295_v38  ;;  %v264_v22 = vmul.f32 %v453_v49, %v453_v49  ;;  %v312_v23 = vsel %vm173_vm1, %v262_v9, 0.0  ;;  %v265_v28 = vmul.f32 %v456_v55, %v456_v55 }
  0x31   : > { %v202_v20 = vadd.f32 %v201_v11, %v200_v13  ;;  %v461_v11 = vunpack.c.h.bf16 %v485_v58  ;;  %v221_v12 = vsel %vm173_vm1, %v460_v4, 0.0  ;;  %v314_v29 = vsel %vm173_vm1, %v263_v15, 0.0 }
  0x32   : > { %v299_v51 = vadd.f32 %v298_v41, %v297_v44  ;;  %v266_v35 = vmul.f32 %v457_v62, %v457_v62  ;;  %v316_v36 = vsel %vm173_vm1, %v264_v22, 0.0  ;;  %v267_v41 = vmul.f32 %v460_v4, %v460_v4 }
  0x33   : > { %v204_v26 = vadd.f32 %v203_v17, %v202_v20  ;;  %v464_v17 = vunpack.c.l.bf16 %v486_v7  ;;  %v223_v18 = vsel %vm173_vm1, %v461_v11, 0.0  ;;  %v487_v20 = vld [vmem:[%s572_s12 + $0x70] sm:$0xff]   ;;  %v318_v42 = vsel %vm173_vm1, %v265_v28, 0.0 }
  0x34   : > { %v301_v57 = vadd.f32 %v300_v48, %v299_v51  ;;  %v268_v47 = vmul.f32 %v461_v11, %v461_v11  ;;  %v320_v48 = vsel %vm173_vm1, %v266_v35, 0.0  ;;  %vm348_vm3 = vcmask 25600  }
  0x35   : > { %v206_v33 = vadd.f32 %v205_v24, %v204_v26  ;;  %v465_v24 = vunpack.c.h.bf16 %v486_v7  ;;  %v225_v25 = vsel %vm173_vm1, %v464_v17, 0.0  ;;  %v269_v53 = vmul.f32 %v464_v17, %v464_v17 }
  0x36   : > { %v303_v0 = vadd.f32 %v302_v54, %v301_v57  ;;  %v322_v54 = vsel %vm173_vm1, %v267_v41, 0.0 }
  0x37   : > { %v208_v39 = vadd.f32 %v207_v30, %v206_v33  ;;  %v468_v30 = vunpack.c.l.bf16 %v487_v20  ;;  %v227_v31 = vsel %vm173_vm1, %v465_v24, 0.0  ;;  %v488_v33 = vld [vmem:[%s572_s12 + $0x78] sm:$0xff]   ;;  %v270_v58 = vmul.f32 %v465_v24, %v465_v24 }
  0x38   : > { %v305_v6 = vadd.f32 %v304_v61, %v303_v0  ;;  %v473_v49 = vunpack.c.h.bf16 %v488_v33 }
  0x39   : > { %v210_v46 = vadd.f32 %v209_v37, %v208_v39  ;;  %v469_v37 = vunpack.c.h.bf16 %v487_v20  ;;  %v229_v38 = vsel %vm173_vm1, %v468_v30, 0.0  ;;  %v271_v62 = vmul.f32 %v468_v30, %v468_v30 }
  0x3a   : > { %v307_v13 = vadd.f32 %v306_v3, %v305_v6  ;;  %v235_v55 = vsel %vm173_vm1, %v473_v49, 0.0  ;;  %v328_v2 = vsel %vm173_vm1, %v270_v58, 0.0 }
  0x3b   : > { %v212_v52 = vadd.f32 %v211_v43, %v210_v46  ;;  %v472_v43 = vunpack.c.l.bf16 %v488_v33  ;;  %v231_v44 = vsel %vm173_vm1, %v469_v37, 0.0  ;;  %v330_v6 = vsel %vm173_vm1, %v271_v62, 0.0 }
  0x3c   : > { %v309_v19 = vadd.f32 %v308_v10, %v307_v13 }
  0x3d   : > { %v214_v59 = vadd.f32 %v213_v50, %v212_v52  ;;  %v233_v50 = vsel %vm173_vm1, %v472_v43, 0.0 }
  0x3e   : > { %v311_v26 = vadd.f32 %v310_v16, %v309_v19 }
  0x3f   : > { %v216_v1 = vadd.f32 %v215_v56, %v214_v59  ;;  %v324_v59 = vsel %vm173_vm1, %v268_v47, 0.0 }
  0x40   : > { %v313_v32 = vadd.f32 %v312_v23, %v311_v26 }
  0x41   : > { %v218_v8 = vadd.f32 %v217_v63, %v216_v1  ;;  %v326_v63 = vsel %vm173_vm1, %v269_v53, 0.0  ;;  %v272_v1 = vmul.f32 %v469_v37, %v469_v37 }
  0x42   : > { %v315_v39 = vadd.f32 %v314_v29, %v313_v32 }
  0x43   : > { %v220_v14 = vadd.f32 %v219_v5, %v218_v8  ;;  %v273_v5 = vmul.f32 %v472_v43, %v472_v43  ;;  %v274_v8 = vmul.f32 %v473_v49, %v473_v49  ;;  %v332_v9 = vsel %vm173_vm1, %v272_v1, 0.0 }
  0x44   : > { %v317_v45 = vadd.f32 %v316_v36, %v315_v39 }
  0x45   : > { %v222_v21 = vadd.f32 %v221_v12, %v220_v14  ;;  %v334_v12 = vsel %vm173_vm1, %v273_v5, 0.0  ;;  %v336_v14 = vsel %vm173_vm1, %v274_v8, 0.0 }
  0x46   : > { %v319_v51 = vadd.f32 %v318_v42, %v317_v45 }
  0x47   : > { %v224_v27 = vadd.f32 %v223_v18, %v222_v21 }
  0x48   : > { %v321_v56 = vadd.f32 %v320_v48, %v319_v51 }
  0x49   : > { %v226_v34 = vadd.f32 %v225_v25, %v224_v27  ;;  %v344_v27 = vld [vmem:[#allocation2] sm:$0x3] }
  0x4a   : > { %v323_v60 = vadd.f32 %v322_v54, %v321_v56 }
  0x4b   : > { %v228_v40 = vadd.f32 %v227_v31, %v226_v34 }
  0x4c   : > { %v325_v0 = vadd.f32 %v324_v59, %v323_v60 }
  0x4d   : > { %v230_v46 = vadd.f32 %v229_v38, %v228_v40 }
  0x4e   : > { %v327_v4 = vadd.f32 %v326_v63, %v325_v0 }
  0x4f   : > { %v232_v52 = vadd.f32 %v231_v44, %v230_v46 }
  0x50   : > { %v329_v7 = vadd.f32 %v328_v2, %v327_v4 }
  0x51   : > { %v234_v57 = vadd.f32 %v233_v50, %v232_v52 }
  0x52   : > { %v331_v11 = vadd.f32 %v330_v6, %v329_v7 }
  0x53   : > { %v236_v61 = vadd.f32 %v235_v55, %v234_v57 }
  0x54   : > { %v333_v13 = vadd.f32 %v332_v9, %v331_v11 }
  0x55   : > { %v237_v3 = vrot.slane %v236_v61, 4 }
  0x56   : > { %v335_v16 = vadd.f32 %v334_v12, %v333_v13 }
  0x57   : > { %v238_v10 = vadd.f32 %v237_v3, %v236_v61 }
  0x58   : > { %v337_v17 = vadd.f32 %v336_v14, %v335_v16 }
  0x59   : > { %v239_v15 = vrot.slane %v238_v10, 2 }
  0x5a   : > { %v338_v19 = vrot.slane %v337_v17, 4 }
  0x5b   : > { %v240_v18 = vadd.f32 %v239_v15, %v238_v10 }
  0x5c   : > { %v339_v20 = vadd.f32 %v338_v19, %v337_v17 }
  0x5d   : > { %v241_v21 = vrot.slane %v240_v18, 1 }
  0x5e   : > { %v340_v22 = vrot.slane %v339_v20, 2 }
  0x5f   : > { %v242_v24 = vadd.f32 %v241_v21, %v240_v18 }
  0x60   : > { %v341_v23 = vadd.f32 %v340_v22, %v339_v20 }
  0x62   : > { %v342_v25 = vrot.slane %v341_v23, 1 }
  0x64   : > { %v343_v26 = vadd.f32 %v342_v25, %v341_v23 }
  0x66   : > { %v346_v28 = vsel %vm345_vm2, %v242_v24, %v343_v26 }
  0x67   : > { %v347_v29 = vadd.f32 %v346_v28, %v344_v27 }
  0x69   : > { %349 = vst.msk [vmem:[#allocation2] sm:$0x3] %vm348_vm3, %v347_v29 }
  0x6a   : > { %490 = dma.vmem_to_hbm [thread:$0]  (%p493_p5), %s357_s14, 32, %s359_s17, [#allocation3]  }
  0x6b   : > { %538 = dma.done.wait (%p493_p5), [#allocation3], 32  }
  0x6c   : > { %540 = vsyncadd (%p493_p5), [#allocation3], 4294967264 }
  0x6d PF: > { %s12_s6 = sadd.s32 1, %s543_s6  }
  0x6e   : > { %p9_p6 = scmp.ge.s32.totalorder %s12_s6, 4  }
  0x70   :  { %11 = sbr.rel (!%p9_p6) target bundleno = 1 (0x1), region = 55 }
  0x75   :  { %372 = vsyncpa [#allocation3], 1 }
  0x76   :  { %374 = vsyncpa [#allocation3 + $0x1], 1 }

</bundles_post_ra>
